<compile_context>
chip_gen: v5e
topology: v5e:2x2
jax: 0.10.0
libtpu: 0.0.40
codegen_flags: <defaults>
</compile_context>

<pallas_src>
import functools

import jax
import jax.numpy as jnp
from jax.experimental import pallas as pl
from jax.experimental.pallas import tpu as pltpu


def _round_up(x, m):
    return (x + m - 1) // m * m


def _vmem_capacity_bytes():
    try:
        return int(pltpu.get_tpu_info().vmem_capacity_bytes)
    except Exception:
        return 64 * 1024 * 1024  # conservative fallback (v7x per-TensorCore VMEM)


def _pick_tile_n(N, C, itemsize, vmem_cap):
    bytes_per_col = max(1, C * itemsize)
    # ~2 MiB of logits per grid step amortizes the per-step overhead to <10% of roofline ...
    tile = (2 * 1024 * 1024) // bytes_per_col
    # ... while the double-buffered logits stream stays within ~1/4 of physical VMEM.
    tile = min(tile, vmem_cap // (8 * bytes_per_col))
    tile = min(tile, 131072)
    tile = min(tile, _round_up(N, 128))
    tile = max(tile, 128)
    return _round_up(tile, 128)


def focal_loss_kernel(alpha_ref, logits_ref, targets_ref, mask_ref, out_ref,
                      *, gamma, n_valid, tile_n):
    """One grid step: a (C, tile_n) slab, points on lanes, classes on sublanes."""
    i = pl.program_id(0)

    x = logits_ref[...].astype(jnp.float32)                         # (C, tile_n)

    # Numerically-stable log-softmax denominator over the class (sublane) axis.
    m = jnp.max(x, axis=0, keepdims=True)                           # (1, tile_n)
    shifted = x - m                                                  # (C, tile_n)
    lse = jnp.log(jnp.sum(jnp.exp(shifted), axis=0, keepdims=True))  # (1, tile_n)

    # Onehot selects: true-class shifted logit and alpha[target]. No (C, tile_n)
    # log_probs slab is ever materialized.
    tgt = targets_ref[...]                                           # (1, tile_n) int32
    cls = jax.lax.broadcasted_iota(jnp.int32, shifted.shape, 0)      # (C, tile_n)
    onehot = cls == tgt
    x_true = jnp.sum(jnp.where(onehot, shifted, 0.0), axis=0, keepdims=True)
    alpha_t = jnp.sum(jnp.where(onehot, alpha_ref[...], 0.0), axis=0, keepdims=True)

    # Everything below is (1, tile_n).
    log_p_true = x_true - lse
    p_true = jnp.exp(log_p_true)
    one_minus_p = 1.0 - p_true        # matches the reference formula bit-for-bit

    # gamma is a trace-time Python constant: integer gamma -> integer_pow (VPU multiplies).
    g = float(gamma)
    if g == round(g) and g >= 0.0:
        gi = int(round(g))
        focal = jnp.ones_like(one_minus_p) if gi == 0 else one_minus_p ** gi
    else:
        focal = one_minus_p ** g

    term = (focal * log_p_true) * (alpha_t * mask_ref[...])

    # Kill the ragged tail with a SELECT (OOB columns may hold garbage / NaN; a multiply
    # by zero would not be enough).
    col = i * tile_n + jax.lax.broadcasted_iota(jnp.int32, term.shape, 1)
    term = jnp.where(col < n_valid, term, 0.0)

    # Per-step partial sum written to this step's own (8,128)-tiled output block so the
    # grid axis can be "parallel" (v7x megacore). Sign and 1/N are folded into the JAX
    # epilogue.
    out_ref[...] = jnp.full(out_ref.shape, jnp.sum(term), dtype=jnp.float32)


def focal_loss(logits, targets, mask, alpha=None, gamma=2.0, tile_n=None,
               class_major=False):
    """Focal loss matching the PyTorch FocalLoss.forward.

    logits: (N, C) float (f32 or bf16); or (C, N) if class_major=True (avoids a transpose).
    targets: (N,) int class indices; mask: (N,) 0/1; alpha: (C,) class weights (or None).
    Returns mean over all N points (including masked ones), like the reference.
    """
    if class_major:
        C, N = logits.shape
        logits_t = logits
    else:
        N, C = logits.shape
        logits_t = jnp.transpose(logits)   # one HBM pass; pass class_major=True to avoid it

    if alpha is None:
        alpha = jnp.ones((C,), jnp.float32)

    itemsize = jnp.dtype(logits.dtype).itemsize
    vmem_cap = _vmem_capacity_bytes()
    if tile_n is None:
        tile_n = _pick_tile_n(N, C, itemsize, vmem_cap)
    tile_n = max(128, _round_up(int(tile_n), 128))

    num_tiles = (N + tile_n - 1) // tile_n

    targets2d = targets.astype(jnp.int32).reshape(1, N)
    mask2d = mask.astype(jnp.float32).reshape(1, N)
    alpha2d = alpha.astype(jnp.float32).reshape(C, 1)

    # Generation-aware VMEM scoped limit (v7x has 64 MiB/TC vs 128 MiB on v5e/v6e).
    per_step = C * tile_n * itemsize + 2 * tile_n * 4 + C * 4 + 8 * 128 * 4
    need = 2 * per_step + (2 << 20)                    # double-buffered streams + headroom
    vmem_limit = int(min(vmem_cap // 2, max(3 * need, 32 * 1024 * 1024)))

    partials = pl.pallas_call(
        functools.partial(focal_loss_kernel, gamma=float(gamma),
                          n_valid=int(N), tile_n=int(tile_n)),
        out_shape=jax.ShapeDtypeStruct((num_tiles, 8, 128), jnp.float32),
        grid_spec=pltpu.PrefetchScalarGridSpec(
            num_scalar_prefetch=0,
            grid=(num_tiles,),
            in_specs=[
                pl.BlockSpec((C, 1), lambda i: (0, 0)),        # alpha (tiny broadcast)
                pl.BlockSpec((C, tile_n), lambda i: (0, i)),   # logits slab (lane-dense)
                pl.BlockSpec((1, tile_n), lambda i: (0, i)),   # targets
                pl.BlockSpec((1, tile_n), lambda i: (0, i)),   # mask
            ],
            out_specs=pl.BlockSpec((1, 8, 128), lambda i: (i, 0, 0)),  # per-step partial
        ),
        compiler_params=pltpu.CompilerParams(
            dimension_semantics=("parallel",),   # no carried state -> megacore-friendly
            vmem_limit_bytes=vmem_limit,
        ),
    )(alpha2d, logits_t, targets2d, mask2d)

    # Tiny epilogue: minus sign and mean-over-all-N (full N, matching the reference,
    # not sum(mask)) folded into one scale.
    return -jnp.sum(partials[:, 0, 0]) / jnp.float32(N)


def focal_loss_ref(logits, targets, mask, alpha, gamma=2.0):
    """Pure-JAX reference matching the PyTorch forward."""
    log_probs = jax.nn.log_softmax(logits.astype(jnp.float32), axis=1)
    probs = jnp.exp(log_probs)
    log_p_true = jnp.take_along_axis(log_probs, targets[:, None], axis=1)[:, 0]
    p_true = jnp.take_along_axis(probs, targets[:, None], axis=1)[:, 0]
    focal_weight = (1.0 - p_true) ** gamma
    alpha_t = alpha[targets]
    focal_weight = focal_weight * alpha_t
    loss = -focal_weight * log_p_true * mask
    return jnp.mean(loss)


if __name__ == "__main__":
    key = jax.random.PRNGKey(0)
    N, C = 256, 8          # N points in the batch, C classes
    gamma = 2.0

    k1, k2, k3 = jax.random.split(key, 3)
    logits = jax.random.normal(k1, (N, C), dtype=jnp.float32)
    targets = jax.random.randint(k2, (N,), 0, C, dtype=jnp.int32)
    # mask of 1s and 0s (e.g. chunk-edge points masked out)
    mask = (jax.random.uniform(k3, (N,)) > 0.2).astype(jnp.float32)
    # deterministic synthetic class weights
    alpha = jnp.linspace(0.5, 1.5, C, dtype=jnp.float32)

    loss = focal_loss(logits, targets, mask, alpha, gamma=gamma)
    jax.block_until_ready(loss)

    ref = focal_loss_ref(logits, targets, mask, alpha, gamma=gamma)
    assert jnp.allclose(loss, ref, rtol=1e-4, atol=1e-5), (loss, ref)

    print("KERNEL_OK")
</pallas_src>

<mosaic_0001>
module attributes {stable_mosaic.version = 11 : i64} {
  func.func @focal_loss_kernel(%arg0: i32, %arg1: memref<8x1xf32, #tpu.memory_space<vmem>>, %arg2: memref<8x256xf32, #tpu.memory_space<vmem>>, %arg3: memref<1x256xi32, #tpu.memory_space<vmem>>, %arg4: memref<1x256xf32, #tpu.memory_space<vmem>>, %arg5: memref<1x8x128xf32, #tpu.memory_space<vmem>>) attributes {dimension_semantics = [#tpu.dimension_semantics<parallel>], iteration_bounds = array<i64: 1>, scalar_prefetch = 0 : i64, scratch_operands = 0 : i64, tpu.core_type = #tpu.core_type<tc>, window_params = [{pipeline_mode = #tpu.pipeline_mode<synchronous>, transform_indices = @transform_0, window_bounds = array<i64: 8, 1>}, {transform_indices = @transform_1, window_bounds = array<i64: 8, 256>}, {transform_indices = @transform_2, window_bounds = array<i64: 1, 256>}, {transform_indices = @transform_3, window_bounds = array<i64: 1, 256>}, {transform_indices = @transform_4, window_bounds = array<i64: 1, 8, 128>}]} {
    %c0 = arith.constant 0 : index
    %c0_0 = arith.constant 0 : index
    %0 = vector.load %arg2[%c0, %c0_0] : memref<8x256xf32, #tpu.memory_space<vmem>>, vector<8x256xf32>
    %cst = arith.constant dense<0xFF800000> : vector<256xf32>
    %1 = vector.multi_reduction <maximumf>, %0, %cst [0] : vector<8x256xf32> to vector<256xf32>
    %2 = vector.shape_cast %1 : vector<256xf32> to vector<1x256xf32>
    %3 = vector.broadcast %2 : vector<1x256xf32> to vector<8x256xf32>
    %4 = arith.subf %0, %3 : vector<8x256xf32>
    %5 = math.exp %4 : vector<8x256xf32>
    %cst_1 = arith.constant dense<0.000000e+00> : vector<256xf32>
    %6 = vector.multi_reduction <add>, %5, %cst_1 [0] : vector<8x256xf32> to vector<256xf32>
    %7 = vector.shape_cast %6 : vector<256xf32> to vector<1x256xf32>
    %8 = math.log %7 : vector<1x256xf32>
    %c0_2 = arith.constant 0 : index
    %c0_3 = arith.constant 0 : index
    %9 = vector.load %arg3[%c0_2, %c0_3] : memref<1x256xi32, #tpu.memory_space<vmem>>, vector<1x256xi32>
    %10 = tpu.iota {dimensions = array<i32: 0>} : vector<8x256xi32>
    %11 = vector.broadcast %9 : vector<1x256xi32> to vector<8x256xi32>
    %12 = arith.cmpi eq, %10, %11 : vector<8x256xi32>
    %cst_4 = arith.constant 0.000000e+00 : f32
    %13 = vector.broadcast %cst_4 : f32 to vector<8x256xf32>
    %14 = arith.select %12, %4, %13 : vector<8x256xi1>, vector<8x256xf32>
    %cst_5 = arith.constant dense<0.000000e+00> : vector<256xf32>
    %15 = vector.multi_reduction <add>, %14, %cst_5 [0] : vector<8x256xf32> to vector<256xf32>
    %16 = vector.shape_cast %15 : vector<256xf32> to vector<1x256xf32>
    %c0_6 = arith.constant 0 : index
    %c0_7 = arith.constant 0 : index
    %17 = vector.load %arg1[%c0_6, %c0_7] : memref<8x1xf32, #tpu.memory_space<vmem>>, vector<8x1xf32>
    %cst_8 = arith.constant 0.000000e+00 : f32
    %18 = vector.shape_cast %17 : vector<8x1xf32> to vector<8x1xf32>
    %19 = vector.broadcast %18 : vector<8x1xf32> to vector<8x256xf32>
    %20 = vector.broadcast %cst_8 : f32 to vector<8x256xf32>
    %21 = arith.select %12, %19, %20 : vector<8x256xi1>, vector<8x256xf32>
    %cst_9 = arith.constant dense<0.000000e+00> : vector<256xf32>
    %22 = vector.multi_reduction <add>, %21, %cst_9 [0] : vector<8x256xf32> to vector<256xf32>
    %23 = vector.shape_cast %22 : vector<256xf32> to vector<1x256xf32>
    %24 = arith.subf %16, %8 : vector<1x256xf32>
    %25 = math.exp %24 : vector<1x256xf32>
    %cst_10 = arith.constant 1.000000e+00 : f32
    %26 = vector.broadcast %cst_10 : f32 to vector<1x256xf32>
    %27 = arith.subf %26, %25 : vector<1x256xf32>
    %28 = arith.mulf %27, %27 : vector<1x256xf32>
    %29 = arith.mulf %28, %24 : vector<1x256xf32>
    %c0_11 = arith.constant 0 : index
    %c0_12 = arith.constant 0 : index
    %30 = vector.load %arg4[%c0_11, %c0_12] : memref<1x256xf32, #tpu.memory_space<vmem>>, vector<1x256xf32>
    %31 = arith.mulf %23, %30 : vector<1x256xf32>
    %32 = arith.mulf %29, %31 : vector<1x256xf32>
    %c256_i32 = arith.constant 256 : i32
    %33 = arith.muli %arg0, %c256_i32 : i32
    %34 = tpu.iota {dimensions = array<i32: 1>} : vector<1x256xi32>
    %35 = vector.broadcast %33 : i32 to vector<1x256xi32>
    %36 = arith.addi %35, %34 : vector<1x256xi32>
    %c256_i32_13 = arith.constant 256 : i32
    %37 = vector.broadcast %c256_i32_13 : i32 to vector<1x256xi32>
    %38 = arith.cmpi slt, %36, %37 : vector<1x256xi32>
    %cst_14 = arith.constant 0.000000e+00 : f32
    %39 = vector.broadcast %cst_14 : f32 to vector<1x256xf32>
    %40 = arith.select %38, %32, %39 : vector<1x256xi1>, vector<1x256xf32>
    %41 = vector.shape_cast %40 : vector<1x256xf32> to vector<1x1x256xf32>
    %cst_15 = arith.constant dense<0.000000e+00> : vector<1xf32>
    %42 = vector.multi_reduction <add>, %41, %cst_15 [1, 2] : vector<1x1x256xf32> to vector<1xf32>
    %43 = vector.shape_cast %42 : vector<1xf32> to vector<1x1x1xf32>
    %44 = vector.extract %43[0, 0, 0] : f32 from vector<1x1x1xf32>
    %45 = vector.broadcast %44 : f32 to vector<1x8x128xf32>
    %c0_16 = arith.constant 0 : index
    %c0_17 = arith.constant 0 : index
    %c0_18 = arith.constant 0 : index
    %46 = vector.load %arg5[%c0_16, %c0_17, %c0_18] : memref<1x8x128xf32, #tpu.memory_space<vmem>>, vector<1x8x128xf32>
    tpu.vector_store %arg5[%c0_16, %c0_17, %c0_18], %45 {strides = array<i32>} : memref<1x8x128xf32, #tpu.memory_space<vmem>>, vector<1x8x128xf32>,
    return
  }
  func.func @transform_0(%arg0: i32) -> (i32, i32) {
    %c0_i32 = arith.constant 0 : i32
    %c0_i32_0 = arith.constant 0 : i32
    %c0_i32_1 = arith.constant 0 : i32
    return %c0_i32, %c0_i32_0 : i32, i32
  }
  func.func @transform_1(%arg0: i32) -> (i32, i32) {
    %c0_i32 = arith.constant 0 : i32
    %c0_i32_0 = arith.constant 0 : i32
    return %c0_i32, %arg0 : i32, i32
  }
  func.func @transform_2(%arg0: i32) -> (i32, i32) {
    %c0_i32 = arith.constant 0 : i32
    %c0_i32_0 = arith.constant 0 : i32
    return %c0_i32, %arg0 : i32, i32
  }
  func.func @transform_3(%arg0: i32) -> (i32, i32) {
    %c0_i32 = arith.constant 0 : i32
    %c0_i32_0 = arith.constant 0 : i32
    return %c0_i32, %arg0 : i32, i32
  }
  func.func @transform_4(%arg0: i32) -> (i32, i32, i32) {
    %c0_i32 = arith.constant 0 : i32
    %c0_i32_0 = arith.constant 0 : i32
    %c0_i32_1 = arith.constant 0 : i32
    return %arg0, %c0_i32, %c0_i32_0 : i32, i32, i32
  }
}

</mosaic_0001>

<bundles_post_ra>
// kernel: tpu_custom_call.1
= control target key start
LH: loop header
LB: loop body
LE: loop exit
PB: predicated region body
PF: predicated region fallthrough
CT: control target
= control target key end

     0   :  { %9 = vsyncpa [#allocation3], 0  ;;  %s303_s0 = inlined_call_operand.vmem [shape: f32[8,1], index: 0, kind: input, shape index: {}]   ;;  %s304_s1 = inlined_call_operand.hbm [shape: f32[8,256], index: 1, kind: input, shape index: {}]   ;;  %s305_s2 = inlined_call_operand.vmem [shape: s32[1,256], index: 2, kind: input, shape index: {}]   ;;  %s306_s3 = inlined_call_operand.vmem [shape: f32[1,256], index: 3, kind: input, shape index: {}]   ;;  %s307_s4 = inlined_call_operand.hbm [shape: f32[1,8,128], index: 4, kind: output, shape index: {}]  }
   0x1   :  { %10 = vsyncpa [#allocation4], 0  ;;  %s18_s17 = sshll.u32 %s304_s1, 4  ;;  %s244_s18 = smov [#allocation2]   ;;  %s19_s17 = int_to_ptr.hbm [resolvable:$true] %s18_s17 }
   0x2   :  { %s20_s19 = sshll.u32 %s244_s18, 4  ;;  %s21_s19 = int_to_ptr.vmem [resolvable:$true] %s20_s19 }
   0x3   :  { %23 = dma.hbm_to_vmem [thread:$0]  %s19_s17, 256, %s21_s19, [#allocation3]  }
   0x4   :  { %240 = dma.done.wait [#allocation3], 256  }
   0x5   :  { %241 = vsyncadd [#allocation3], 4294967040  ;;  %v245_v0 = vmov 0   ;;  %v89_v1 = vld [vmem:[%s303_s0] sm:$0xff]  ;;  %v33_v3 = vld [vmem:[#allocation2 + $0x8] sm:$0xff]  ;;  %v69_v22 = vlaneseq  ;;  %vm142_vm2 = vcmask 1040384  }
   0x6   :  { %179 = vset.pattern.permute.xlu0 %v245_v0  ;;  %v32_v2 = vld [vmem:[#allocation2] sm:$0xff]  ;;  %v40_v5 = vrot.slane %v33_v3, 4  ;;  %s164_s26 = sshll.u32 %s307_s4, 4  ;;  %s165_s26 = int_to_ptr.hbm [resolvable:$true] %s164_s26 }
   0x7   :  { %92 = vperm.xlu0 %179, %v89_v1   ;;  %v34_v4 = vrot.slane %v32_v2, 4  ;;  %v68_v25 = vld [vmem:[%s305_s2] sm:$0x3]  ;;  %v70_v26 = vshrl.u32 %v69_v22, 7 }
   0x8   :  { %v41_v7 = vmax.f32 %v33_v3, %v40_v5  ;;  %v71_v27 = vperm.slane %v68_v25, 0  ;;  %v72_v29 = vperm.slane %v68_v25, 1 }
   0x9   :  { %v35_v6 = vmax.f32 %v32_v2, %v34_v4 }
   0xa   :  { %v42_v9 = vrot.slane %v41_v7, 2  ;;  %vm281_vm0 = vcmp.eq.s32.totalorder %v70_v26, %v71_v27  ;;  %vm285_vm1 = vcmp.eq.s32.totalorder %v70_v26, %v72_v29 }
   0xb   :  { %v36_v8 = vrot.slane %v35_v6, 2 }
   0xc   :  { %v43_v11 = vmax.f32 %v41_v7, %v42_v9 }
   0xd   :  { %v37_v10 = vmax.f32 %v35_v6, %v36_v8 }
   0xe   :  { %v44_v13 = vrot.slane %v43_v11, 1 }
   0xf   :  { %v38_v12 = vrot.slane %v37_v10, 1 }
  0x10   :  { %v45_v15 = vmax.f32 %v43_v11, %v44_v13 }
  0x11   :  { %v39_v14 = vmax.f32 %v37_v10, %v38_v12  ;;  %v121_v12 = vld [vmem:[%s306_s3] sm:$0x3]  ;;  %s246_s3 = smov [#allocation5]  }
  0x12   :  { %v47_v17 = vsub.f32 %v33_v3, %v45_v15  ;;  %s162_s23 = sshll.u32 %s246_s3, 4  ;;  %s163_s23 = int_to_ptr.vmem [resolvable:$true] %s162_s23 }
  0x13   :  { %v46_v16 = vsub.f32 %v32_v2, %v39_v14 }
  0x14   :  { %v50_v19 = vmul.f32 1.442695, %v47_v17  ;;  %v76_v36 = vsel %vm285_vm1, %v47_v17, 0.0 }
  0x15   :  { %v48_v18 = vmul.f32 1.442695, %v46_v16  ;;  %v75_v35 = vsel %vm281_vm0, %v46_v16, 0.0  ;;  %v83_v40 = vrot.slane %v76_v36, 4 }
  0x16   :  { %v77_v38 = vrot.slane %v75_v35, 4 }
  0x17   :  { %180 = vpow2.f32 %v48_v18  ;;  %v84_v44 = vadd.f32 %v83_v40, %v76_v36 }
  0x18   :  { %182 = vpow2.f32 %v50_v19  ;;  %v78_v42 = vadd.f32 %v77_v38, %v75_v35  ;;  %v123_v19 = vperm.slane %v121_v12, 0 }
  0x19   :  { %v85_v48 = vrot.slane %v84_v44, 2 }
  0x1a   :  { %v79_v46 = vrot.slane %v78_v42, 2 }
  0x1b   :  { %v86_v50 = vadd.f32 %v85_v48, %v84_v44 }
  0x1c   :  { %v80_v49 = vadd.f32 %v79_v46, %v78_v42 }
  0x1d   :  { %v181_v20 = vpop.eup %180  ;;  %v87_v53 = vrot.slane %v86_v50, 1 }
  0x1e   :  { %v183_v21 = vpop.eup %182  ;;  %v52_v23 = vrot.slane %v181_v20, 4  ;;  %v81_v51 = vrot.slane %v80_v49, 1 }
  0x1f   :  { %v58_v24 = vrot.slane %v183_v21, 4  ;;  %v88_v57 = vadd.f32 %v87_v53, %v86_v50 }
  0x20   :  { %v53_v28 = vadd.f32 %v181_v20, %v52_v23  ;;  %v82_v55 = vadd.f32 %v81_v51, %v80_v49  ;;  %v124_v20 = vperm.slane %v121_v12, 1 }
  0x21   :  { %v59_v30 = vadd.f32 %v183_v21, %v58_v24 }
  0x22   :  { %v54_v33 = vrot.slane %v53_v28, 2 }
  0x23   :  { %v60_v34 = vrot.slane %v59_v30, 2 }
  0x24   :  { %v55_v37 = vadd.f32 %v54_v33, %v53_v28 }
  0x25   :  { %v61_v39 = vadd.f32 %v60_v34, %v59_v30 }
  0x26   :  { %v56_v41 = vrot.slane %v55_v37, 1 }
  0x27   :  { %v62_v43 = vrot.slane %v61_v39, 1 }
  0x28   :  { %v57_v45 = vadd.f32 %v56_v41, %v55_v37 }
  0x29   :  { %v63_v47 = vadd.f32 %v62_v43, %v61_v39 }
  0x2a   :  { %184 = vlog2.f32 %v57_v45 }
  0x2b   :  { %186 = vlog2.f32 %v63_v47 }
  0x30   :  { %v185_v52 = vpop.eup %184 }
  0x31   :  { %v187_v54 = vpop.eup %186  ;;  %v65_v56 = vmul.f32 0.6931472, %v185_v52 }
  0x32   :  { %v67_v58 = vmul.f32 0.6931472, %v187_v54 }
  0x33   :  { %v109_v59 = vsub.f32 %v82_v55, %v65_v56 }
  0x34   :  { %v110_v60 = vsub.f32 %v88_v57, %v67_v58 }
  0x35   :  { %v111_v61 = vmul.f32 1.442695, %v109_v59 }
  0x36   :  { %v113_v62 = vmul.f32 1.442695, %v110_v60 }
  0x37   :  { %188 = vpow2.f32 %v111_v61 }
  0x38   :  { %190 = vpow2.f32 %v113_v62 }
  0x3d   :  { %v189_v63 = vpop.eup %188 }
  0x3e   :  { %v191_v1 = vpop.eup %190  ;;  %v115_v8 = vsub.f32 1.0, %v189_v63 }
  0x3f   :  { %v116_v9 = vsub.f32 1.0, %v191_v1 }
  0x40   :  { %v117_v15 = vmul.f32 %v115_v8, %v115_v8 }
  0x41   :  { %v118_v16 = vmul.f32 %v116_v9, %v116_v9 }
  0x42   :  { %v119_v23 = vmul.f32 %v117_v15, %v109_v59 }
  0x43   :  { %v120_v24 = vmul.f32 %v118_v16, %v110_v60 }
  0x79   :  { %v93_v0 = vpop.permute.xlu0 %92 }
  0x7a   :  { %v95_v2 = vsel %vm281_vm0, %v93_v0, 0.0  ;;  %v96_v3 = vsel %vm285_vm1, %v93_v0, 0.0 }
  0x7b   :  { %v97_v4 = vrot.slane %v95_v2, 4  ;;  %v103_v5 = vrot.slane %v96_v3, 4 }
  0x7d   :  { %v98_v6 = vadd.f32 %v97_v4, %v95_v2  ;;  %v104_v7 = vadd.f32 %v103_v5, %v96_v3 }
  0x7f   :  { %v99_v10 = vrot.slane %v98_v6, 2  ;;  %v105_v11 = vrot.slane %v104_v7, 2 }
  0x81   :  { %v100_v13 = vadd.f32 %v99_v10, %v98_v6  ;;  %v106_v14 = vadd.f32 %v105_v11, %v104_v7 }
  0x83   :  { %v101_v17 = vrot.slane %v100_v13, 1  ;;  %v107_v18 = vrot.slane %v106_v14, 1 }
  0x85   :  { %v102_v21 = vadd.f32 %v101_v17, %v100_v13  ;;  %v108_v22 = vadd.f32 %v107_v18, %v106_v14 }
  0x87   :  { %v127_v25 = vmul.f32 %v123_v19, %v102_v21  ;;  %v128_v26 = vmul.f32 %v124_v20, %v108_v22 }
  0x89   :  { %v129_v27 = vmul.f32 %v127_v25, %v119_v23  ;;  %v130_v28 = vmul.f32 %v128_v26, %v120_v24 }
  0x8b   :  { %v143_v29 = vsel %vm142_vm2, %v129_v27, 0.0  ;;  %v144_v30 = vsel %vm142_vm2, %v130_v28, 0.0 }
  0x8c   :  { %v145_v31 = vadd.f32 %v144_v30, %v143_v29 }
  0x8e   :  { %146 = vadd.xlane.f32.xlu0 %v145_v31 }
 0x101   :  { %v147_v32 = vpop.xlane.xlu0 %146 }
 0x102   :  { %v148_v33 = vrot.slane %v147_v32, 4 }
 0x104   :  { %v149_v34 = vadd.f32 %v148_v33, %v147_v32 }
 0x106   :  { %v150_v35 = vrot.slane %v149_v34, 2 }
 0x108   :  { %v151_v36 = vadd.f32 %v150_v35, %v149_v34 }
 0x10a   :  { %v152_v37 = vrot.slane %v151_v36, 1 }
 0x10c   :  { %v153_v38 = vadd.f32 %v152_v37, %v151_v36 }
 0x10e   :  { %174 = vpush %v153_v38 }
 0x13f   :  { %s175_s27 = spop %174 }
 0x140   :  { %v155_v39 = vstv %s175_s27 }
 0x141   :  { %156 = vst [vmem:[#allocation5] sm:$0xff] %v155_v39 }
 0x142   :  { %167 = dma.vmem_to_hbm [thread:$0]  %s163_s23, 128, %s165_s26, [#allocation4]  }
 0x143   :  { %242 = dma.done.wait [#allocation4], 128  }
 0x144   :  { %243 = vsyncadd [#allocation4], 4294967168 }
 0x145   :  { %172 = vsyncpa [#allocation3], 1 }
 0x146   :  { %173 = vsyncpa [#allocation4], 1 }

</bundles_post_ra>
